<compile_context>
chip_gen: v5e
topology: v5e:2x2
jax: 0.10.0
libtpu: 0.0.40
codegen_flags: <defaults>
</compile_context>

<pallas_src>
import jax
import jax.numpy as jnp
from jax.experimental import pallas as pl
from jax.experimental.pallas import tpu as pltpu


HEAD_LANES = 128  # lane-dense padded width for the fused actor/critic head


def _round_up(x, m):
    return (x + m - 1) // m * m


# ----------------------------------------------------------------------------
# Pallas kernel: 2 shared Linear+ReLU layers + one fused (mean | value | pad)
# head matmul.  Only the first (action_dim + 1) columns of the head result are
# stored (narrow HBM writeback); weights stay VMEM-resident across batch tiles.
# ----------------------------------------------------------------------------
def ppo_forward_kernel(x_ref, w1_ref, b1_ref, w2_ref, b2_ref,
                       wh_ref, bh_ref, out_ref):
    x = x_ref[...]

    # shared_layers: Linear -> ReLU -> Linear -> ReLU
    h1 = jnp.dot(x, w1_ref[...], preferred_element_type=jnp.float32) + b1_ref[...]
    h1 = jnp.maximum(h1, 0.0)
    h2 = jnp.dot(h1, w2_ref[...], preferred_element_type=jnp.float32) + b2_ref[...]
    h2 = jnp.maximum(h2, 0.0)

    # fused heads: columns [0:action_dim] = actor mean, [action_dim] = value.
    head = (jnp.dot(h2, wh_ref[...], preferred_element_type=jnp.float32)
            + bh_ref[...])
    # store only the useful columns -> narrow HBM output (masked vst, but
    # >10x less writeback bandwidth than the 128-lane padded slab).
    out_ref[...] = head[:, :out_ref.shape[-1]]


def ppo_forward(state, params, tile_b_max=2048):
    """Run the PPO forward pass via a single pallas_call.

    Returns (action_mean (B, A), action_std (A,), value (B, 1)) like the
    PyTorch module.
    """
    B, state_dim = state.shape
    hidden_dim = params["w1"].shape[1]
    action_dim = params["actor_std"].shape[0]
    out_cols = action_dim + 1
    assert out_cols <= HEAD_LANES, "fused head packing assumes action_dim+1 <= 128"

    w_head = params["w_head"]   # (hidden, 128), pre-packed at init
    b_head = params["b_head"]   # (1, 128)

    # ---- pad batch only to the f32 sublane granularity (8 rows) ----
    Bp = _round_up(B, 8)
    x = state if Bp == B else jnp.pad(state, ((0, Bp - B), (0, 0)))

    # ---- pick the batch tile ----
    # working set per row (input + h1 + h2 + 128-lane head result + output), f32
    bytes_per_row = 4 * (state_dim + 2 * hidden_dim + HEAD_LANES + out_cols)
    weight_bytes = 4 * (state_dim * hidden_dim + hidden_dim * hidden_dim
                        + hidden_dim * HEAD_LANES + 2 * hidden_dim + HEAD_LANES)
    try:  # per-generation VMEM capacity (v7x: 64 MiB, v5e/v6e: 128 MiB)
        vmem_cap = int(getattr(pltpu.get_tpu_info(), "vmem_capacity_bytes"))
    except Exception:
        vmem_cap = 64 * 1024 * 1024  # conservative fallback (v7x-sized)
    budget = vmem_cap // 2  # leave headroom for compiler temporaries / spills

    max_rows = max(8, ((budget - 2 * weight_bytes) // (2 * bytes_per_row)) // 8 * 8)
    tile_b = min(tile_b_max, Bp, max_rows)
    tile_b = max(8, (tile_b // 8) * 8)
    if Bp > 8 and tile_b >= Bp:
        # split so the "parallel" batch grid has >=2 steps (v7x has 2 TCs)
        tile_b = max(8, _round_up(pl.cdiv(Bp, 2), 8))
    grid_b = pl.cdiv(Bp, tile_b)

    vmem_limit = int(min(budget,
                         max(2 * (2 * bytes_per_row * tile_b + weight_bytes)
                             + (4 << 20),
                             32 * 1024 * 1024)))

    const2 = lambda i: (0, 0)  # weights/biases stay VMEM-resident across tiles

    out = pl.pallas_call(
        ppo_forward_kernel,
        out_shape=jax.ShapeDtypeStruct((Bp, out_cols), jnp.float32),
        grid=(grid_b,),
        in_specs=[
            pl.BlockSpec((tile_b, state_dim), lambda i: (i, 0)),     # state
            pl.BlockSpec((state_dim, hidden_dim), const2),           # w1
            pl.BlockSpec((1, hidden_dim), const2),                   # b1
            pl.BlockSpec((hidden_dim, hidden_dim), const2),          # w2
            pl.BlockSpec((1, hidden_dim), const2),                   # b2
            pl.BlockSpec((hidden_dim, HEAD_LANES), const2),          # fused W
            pl.BlockSpec((1, HEAD_LANES), const2),                   # fused b
        ],
        out_specs=pl.BlockSpec((tile_b, out_cols), lambda i: (i, 0)),
        compiler_params=pltpu.CompilerParams(
            dimension_semantics=("parallel",),
            vmem_limit_bytes=vmem_limit),
    )(x, params["w1"], params["b1"], params["w2"], params["b2"],
      w_head, b_head)

    action_mean = out[:B, :action_dim]
    value = out[:B, action_dim:action_dim + 1]
    # batch-independent: compute once in plain JAX, not in the kernel
    action_std = jax.nn.softplus(params["actor_std"])
    return action_mean, action_std, value


# ----------------------------------------------------------------------------
# Deterministic parameter initialization, mirroring PPONetwork._init_weights:
# orthogonal(gain=sqrt(2)) for Linear weights, zeros for biases,
# actor_std = 0.5 * ones(action_dim).  The fused head (mean | value | pad) is
# packed here ONCE so the per-call wrapper has no scatter/zeros ops.
# ----------------------------------------------------------------------------
def _orthogonal(key, out_features, in_features, gain):
    n = max(out_features, in_features)
    a = jax.random.normal(key, (n, n), dtype=jnp.float32)
    q, r = jnp.linalg.qr(a)
    d = jnp.diagonal(r)
    q = q * jnp.where(d >= 0, 1.0, -1.0)      # make decomposition unique
    w = q[:out_features, :in_features]
    return (gain * w).astype(jnp.float32)


def init_params(key, state_dim, action_dim, hidden_dim=64):
    assert action_dim + 1 <= HEAD_LANES
    gain = jnp.sqrt(2.0)
    k1, k2, k3, k4 = jax.random.split(key, 4)
    # PyTorch Linear stores (out, in); transpose so the kernel does x @ W.
    w1 = _orthogonal(k1, hidden_dim, state_dim, gain).T      # (state_dim, hidden)
    w2 = _orthogonal(k2, hidden_dim, hidden_dim, gain).T     # (hidden, hidden)
    wm = _orthogonal(k3, action_dim, hidden_dim, gain).T     # (hidden, action_dim)
    wc = _orthogonal(k4, 1, hidden_dim, gain).T              # (hidden, 1)
    bm = jnp.zeros((1, action_dim), jnp.float32)
    bc = jnp.zeros((1, 1), jnp.float32)

    # pre-pack the fused lane-dense head (zeros pad beyond action_dim + 1)
    w_head = jnp.zeros((hidden_dim, HEAD_LANES), jnp.float32)
    w_head = w_head.at[:, :action_dim].set(wm)
    w_head = w_head.at[:, action_dim:action_dim + 1].set(wc)
    b_head = jnp.zeros((1, HEAD_LANES), jnp.float32)
    b_head = b_head.at[:, :action_dim].set(bm)
    b_head = b_head.at[:, action_dim:action_dim + 1].set(bc)

    return {
        "w1": w1, "b1": jnp.zeros((1, hidden_dim), jnp.float32),
        "w2": w2, "b2": jnp.zeros((1, hidden_dim), jnp.float32),
        "wm": wm, "bm": bm, "wc": wc, "bc": bc,
        "w_head": w_head, "b_head": b_head,
        "actor_std": 0.5 * jnp.ones((action_dim,), jnp.float32),
    }


# Pure-JAX reference for a sanity check.
def ppo_forward_ref(state, p):
    h1 = jnp.maximum(state @ p["w1"] + p["b1"], 0.0)
    h2 = jnp.maximum(h1 @ p["w2"] + p["b2"], 0.0)
    mean = h2 @ p["wm"] + p["bm"]
    value = h2 @ p["wc"] + p["bc"]
    std = jax.nn.softplus(p["actor_std"])
    return mean, std, value


if __name__ == "__main__":
    state_dim, action_dim, hidden_dim = 8, 3, 64

    key = jax.random.PRNGKey(0)
    k_params, k_state1, k_state2 = jax.random.split(key, 3)
    params = init_params(k_params, state_dim, action_dim, hidden_dim)

    # small batch (single 8-row tile after sublane padding)
    B = 4
    state = jax.random.normal(k_state1, (B, state_dim), dtype=jnp.float32)
    mean, std, value = ppo_forward(state, params)
    jax.block_until_ready((mean, std, value))

    ref_mean, ref_std, ref_value = ppo_forward_ref(state, params)
    assert mean.shape == (B, action_dim)
    assert std.shape == (action_dim,)
    assert value.shape == (B, 1)
    assert jnp.allclose(mean, ref_mean, atol=1e-5, rtol=1e-5)
    assert jnp.allclose(std, ref_std, atol=1e-5, rtol=1e-5)
    assert jnp.allclose(value, ref_value, atol=1e-5, rtol=1e-5)

    # slightly larger batch: exercises the >=2-step "parallel" grid split and
    # the partial edge block (Bp not a multiple of tile_b).
    B2 = 50
    state2 = jax.random.normal(k_state2, (B2, state_dim), dtype=jnp.float32)
    mean2, std2, value2 = ppo_forward(state2, params)
    jax.block_until_ready((mean2, std2, value2))
    ref_mean2, _, ref_value2 = ppo_forward_ref(state2, params)
    assert mean2.shape == (B2, action_dim)
    assert value2.shape == (B2, 1)
    assert jnp.allclose(mean2, ref_mean2, atol=1e-5, rtol=1e-5)
    assert jnp.allclose(value2, ref_value2, atol=1e-5, rtol=1e-5)

    print("KERNEL_OK")
</pallas_src>

<mosaic_0001>
module attributes {stable_mosaic.version = 11 : i64} {
  func.func @ppo_forward_kernel(%arg0: i32, %arg1: memref<8x8xf32, #tpu.memory_space<vmem>>, %arg2: memref<8x64xf32, #tpu.memory_space<vmem>>, %arg3: memref<1x64xf32, #tpu.memory_space<vmem>>, %arg4: memref<64x64xf32, #tpu.memory_space<vmem>>, %arg5: memref<1x64xf32, #tpu.memory_space<vmem>>, %arg6: memref<64x128xf32, #tpu.memory_space<vmem>>, %arg7: memref<1x128xf32, #tpu.memory_space<vmem>>, %arg8: memref<8x4xf32, #tpu.memory_space<vmem>>) attributes {dimension_semantics = [#tpu.dimension_semantics<parallel>], iteration_bounds = array<i64: 1>, scalar_prefetch = 0 : i64, scratch_operands = 0 : i64, tpu.core_type = #tpu.core_type<tc>, window_params = [{transform_indices = @transform_0, window_bounds = array<i64: 8, 8>}, {pipeline_mode = #tpu.pipeline_mode<synchronous>, transform_indices = @transform_1, window_bounds = array<i64: 8, 64>}, {pipeline_mode = #tpu.pipeline_mode<synchronous>, transform_indices = @transform_2, window_bounds = array<i64: 1, 64>}, {pipeline_mode = #tpu.pipeline_mode<synchronous>, transform_indices = @transform_3, window_bounds = array<i64: 64, 64>}, {pipeline_mode = #tpu.pipeline_mode<synchronous>, transform_indices = @transform_4, window_bounds = array<i64: 1, 64>}, {pipeline_mode = #tpu.pipeline_mode<synchronous>, transform_indices = @transform_5, window_bounds = array<i64: 64, 128>}, {pipeline_mode = #tpu.pipeline_mode<synchronous>, transform_indices = @transform_6, window_bounds = array<i64: 1, 128>}, {transform_indices = @transform_7, window_bounds = array<i64: 8, 4>}]} {
    %c0 = arith.constant 0 : index
    %c0_0 = arith.constant 0 : index
    %0 = vector.load %arg1[%c0, %c0_0] : memref<8x8xf32, #tpu.memory_space<vmem>>, vector<8x8xf32>
    %c0_1 = arith.constant 0 : index
    %c0_2 = arith.constant 0 : index
    %1 = vector.load %arg2[%c0_1, %c0_2] : memref<8x64xf32, #tpu.memory_space<vmem>>, vector<8x64xf32>
    %cst = arith.constant dense<0.000000e+00> : vector<8x64xf32>
    %2 = tpu.matmul %0, %1, %cst {dimension_numbers = #tpu.dot_dimension_numbers<[1], [0], [0], [1], [0, 0, 1, 1], [], []>} : vector<8x8xf32>, vector<8x64xf32>, vector<8x64xf32> -> vector<8x64xf32>
    %c0_3 = arith.constant 0 : index
    %c0_4 = arith.constant 0 : index
    %3 = vector.load %arg3[%c0_3, %c0_4] : memref<1x64xf32, #tpu.memory_space<vmem>>, vector<1x64xf32>
    %4 = vector.broadcast %3 : vector<1x64xf32> to vector<8x64xf32>
    %5 = arith.addf %2, %4 : vector<8x64xf32>
    %cst_5 = arith.constant 0.000000e+00 : f32
    %6 = vector.broadcast %cst_5 : f32 to vector<8x64xf32>
    %7 = arith.maximumf %5, %6 : vector<8x64xf32>
    %c0_6 = arith.constant 0 : index
    %c0_7 = arith.constant 0 : index
    %8 = vector.load %arg4[%c0_6, %c0_7] : memref<64x64xf32, #tpu.memory_space<vmem>>, vector<64x64xf32>
    %cst_8 = arith.constant dense<0.000000e+00> : vector<8x64xf32>
    %9 = tpu.matmul %7, %8, %cst_8 {dimension_numbers = #tpu.dot_dimension_numbers<[1], [0], [0], [1], [0, 0, 1, 1], [], []>} : vector<8x64xf32>, vector<64x64xf32>, vector<8x64xf32> -> vector<8x64xf32>
    %c0_9 = arith.constant 0 : index
    %c0_10 = arith.constant 0 : index
    %10 = vector.load %arg5[%c0_9, %c0_10] : memref<1x64xf32, #tpu.memory_space<vmem>>, vector<1x64xf32>
    %11 = vector.broadcast %10 : vector<1x64xf32> to vector<8x64xf32>
    %12 = arith.addf %9, %11 : vector<8x64xf32>
    %cst_11 = arith.constant 0.000000e+00 : f32
    %13 = vector.broadcast %cst_11 : f32 to vector<8x64xf32>
    %14 = arith.maximumf %12, %13 : vector<8x64xf32>
    %c0_12 = arith.constant 0 : index
    %c0_13 = arith.constant 0 : index
    %15 = vector.load %arg6[%c0_12, %c0_13] : memref<64x128xf32, #tpu.memory_space<vmem>>, vector<64x128xf32>
    %cst_14 = arith.constant dense<0.000000e+00> : vector<8x128xf32>
    %16 = tpu.matmul %14, %15, %cst_14 {dimension_numbers = #tpu.dot_dimension_numbers<[1], [0], [0], [1], [0, 0, 1, 1], [], []>} : vector<8x64xf32>, vector<64x128xf32>, vector<8x128xf32> -> vector<8x128xf32>
    %c0_15 = arith.constant 0 : index
    %c0_16 = arith.constant 0 : index
    %17 = vector.load %arg7[%c0_15, %c0_16] : memref<1x128xf32, #tpu.memory_space<vmem>>, vector<1x128xf32>
    %18 = vector.broadcast %17 : vector<1x128xf32> to vector<8x128xf32>
    %19 = arith.addf %16, %18 : vector<8x128xf32>
    %20 = vector.extract_strided_slice %19 {offsets = [0, 0], sizes = [8, 4], strides = [1, 1]} : vector<8x128xf32> to vector<8x4xf32>
    %c0_17 = arith.constant 0 : index
    %c0_18 = arith.constant 0 : index
    %21 = vector.load %arg8[%c0_17, %c0_18] : memref<8x4xf32, #tpu.memory_space<vmem>>, vector<8x4xf32>
    tpu.vector_store %arg8[%c0_17, %c0_18], %20 {strides = array<i32>} : memref<8x4xf32, #tpu.memory_space<vmem>>, vector<8x4xf32>,
    return
  }
  func.func @transform_0(%arg0: i32) -> (i32, i32) {
    %c0_i32 = arith.constant 0 : i32
    %c0_i32_0 = arith.constant 0 : i32
    return %arg0, %c0_i32 : i32, i32
  }
  func.func @transform_1(%arg0: i32) -> (i32, i32) {
    %c0_i32 = arith.constant 0 : i32
    %c0_i32_0 = arith.constant 0 : i32
    %c0_i32_1 = arith.constant 0 : i32
    return %c0_i32, %c0_i32_0 : i32, i32
  }
  func.func @transform_2(%arg0: i32) -> (i32, i32) {
    %c0_i32 = arith.constant 0 : i32
    %c0_i32_0 = arith.constant 0 : i32
    %c0_i32_1 = arith.constant 0 : i32
    return %c0_i32, %c0_i32_0 : i32, i32
  }
  func.func @transform_3(%arg0: i32) -> (i32, i32) {
    %c0_i32 = arith.constant 0 : i32
    %c0_i32_0 = arith.constant 0 : i32
    %c0_i32_1 = arith.constant 0 : i32
    return %c0_i32, %c0_i32_0 : i32, i32
  }
  func.func @transform_4(%arg0: i32) -> (i32, i32) {
    %c0_i32 = arith.constant 0 : i32
    %c0_i32_0 = arith.constant 0 : i32
    %c0_i32_1 = arith.constant 0 : i32
    return %c0_i32, %c0_i32_0 : i32, i32
  }
  func.func @transform_5(%arg0: i32) -> (i32, i32) {
    %c0_i32 = arith.constant 0 : i32
    %c0_i32_0 = arith.constant 0 : i32
    %c0_i32_1 = arith.constant 0 : i32
    return %c0_i32, %c0_i32_0 : i32, i32
  }
  func.func @transform_6(%arg0: i32) -> (i32, i32) {
    %c0_i32 = arith.constant 0 : i32
    %c0_i32_0 = arith.constant 0 : i32
    %c0_i32_1 = arith.constant 0 : i32
    return %c0_i32, %c0_i32_0 : i32, i32
  }
  func.func @transform_7(%arg0: i32) -> (i32, i32) {
    %c0_i32 = arith.constant 0 : i32
    %c0_i32_0 = arith.constant 0 : i32
    return %arg0, %c0_i32 : i32, i32
  }
}

</mosaic_0001>

<bundles_post_ra>
// kernel: tpu_custom_call.1
= control target key start
LH: loop header
LB: loop body
LE: loop exit
PB: predicated region body
PF: predicated region fallthrough
CT: control target
= control target key end

     0   :  { %12 = vsyncpa [#allocation3], 0  ;;  %s381_s0 = inlined_call_operand.hbm [shape: f32[8,8], index: 0, kind: input, shape index: {}]   ;;  %s382_s1 = inlined_call_operand.hbm [shape: f32[8,64], index: 1, kind: input, shape index: {}]   ;;  %s383_s2 = inlined_call_operand.vmem [shape: f32[1,64], index: 2, kind: input, shape index: {}]   ;;  %s384_s3 = inlined_call_operand.hbm [shape: f32[64,64], index: 3, kind: input, shape index: {}]   ;;  %s385_s4 = inlined_call_operand.vmem [shape: f32[1,64], index: 4, kind: input, shape index: {}]   ;;  %s386_s5 = inlined_call_operand.hbm [shape: f32[64,128], index: 5, kind: input, shape index: {}]   ;;  %s387_s6 = inlined_call_operand.vmem [shape: f32[1,128], index: 6, kind: input, shape index: {}]   ;;  %s388_s7 = inlined_call_operand.vmem [shape: f32[8,4], index: 7, kind: output, shape index: {}]  }
   0x1   :  { %13 = vsyncpa [#allocation5], 0  ;;  %s31_s26 = sshll.u32 %s382_s1, 4  ;;  %s32_s26 = int_to_ptr.hbm [resolvable:$true] %s31_s26 }
   0x2   :  { %14 = vsyncpa [#allocation8], 0  ;;  %s311_s27 = smov [#allocation4]   ;;  %s20_s8 = sshll.u32 %s381_s0, 4  ;;  %s21_s8 = int_to_ptr.hbm [resolvable:$true] %s20_s8 }
   0x3   :  { %s33_s28 = sshll.u32 %s311_s27, 4  ;;  %s312_s9 = smov [#allocation2]   ;;  %s34_s28 = int_to_ptr.vmem [resolvable:$true] %s33_s28 }
   0x4   :  { %36 = dma.hbm_to_vmem [thread:$0]  %s32_s26, 128, %s34_s28, [#allocation5]  }
   0x5   :  { %s22_s10 = sshll.u32 %s312_s9, 4  ;;  %s43_s13 = sshll.u32 %s384_s3, 4  ;;  %s23_s10 = int_to_ptr.vmem [resolvable:$true] %s22_s10  ;;  %s44_s13 = int_to_ptr.hbm [resolvable:$true] %s43_s13 }
   0x6   :  { %25 = dma.hbm_to_vmem [thread:$0]  %s21_s8, 128, %s23_s10, [#allocation3]  }
   0x7   :  { %s313_s1 = smov [#allocation6]   ;;  %s58_s17 = sshll.u32 %s386_s5, 4  ;;  %s59_s17 = int_to_ptr.hbm [resolvable:$true] %s58_s17 }
   0x8   :  { %s45_s14 = sshll.u32 %s313_s1, 4  ;;  %s314_s18 = smov 128   ;;  %s46_s14 = int_to_ptr.vmem [resolvable:$true] %s45_s14 }
   0x9   :  { %s315_s0 = smov 8   ;;  %s316_s19 = smov [#allocation7]  }
   0xa   :  { %51 = dma.hbm_to_vmem [thread:$0]  %s44_s13, 1024, %s46_s14, [#allocation5], %s314_s18, %s314_s18, %s315_s0  }
   0xb   :  { %s60_s20 = sshll.u32 %s316_s19, 4  ;;  %s61_s20 = int_to_ptr.vmem [resolvable:$true] %s60_s20 }
   0xc   :  { %66 = dma.hbm_to_vmem [thread:$0]  %s59_s17, 1024, %s61_s20, [#allocation8], %s314_s18, %s314_s18, %s315_s0  }
   0xd   :  { %305 = dma.done.wait [#allocation3], 128  }
   0xe   :  { %306 = vsyncadd [#allocation3], 4294967168 }
   0xf   :  { %307 = dma.done.wait [#allocation5], 1152  }
  0x10   :  { %308 = vsyncadd [#allocation5], 4294966144 }
  0x11   :  { %309 = dma.done.wait [#allocation8], 1024  }
  0x12   :  { %310 = vsyncadd [#allocation8], 4294966272  ;;  %vm91_vm0 = vcmask 64512   ;;  %v86_v0 = vld [vmem:[#allocation4] sm:$0xff]  ;;  %v85_v1 = vld [vmem:[#allocation2] sm:$0xff]  ;;  %vm128_vm1 = vcmask 523264  }
  0x13   :  { %v123_v2 = vld [vmem:[#allocation6 + $0x38] sm:$0xff]  ;;  %110 = vmatpush.msra.mxu0 %v86_v0  ;;  %v122_v3 = vld [vmem:[#allocation6 + $0x30] sm:$0xff]  ;;  %v121_v4 = vld [vmem:[#allocation6 + $0x28] sm:$0xff]  ;;  %vm188_vm2 = vcmask 31744  }
  0x14   :  { %140 = vmatpush.msra.mxu1 %v123_v2  ;;  %197 = vmatmul.msk.f32.vlgmr.msra.gmra.mxu0 %vm91_vm0, %v85_v1  ;;  %v120_v5 = vld [vmem:[#allocation6 + $0x20] sm:$0xff]  ;;  %v119_v6 = vld [vmem:[#allocation6 + $0x18] sm:$0xff]  ;;  %v118_v7 = vld [vmem:[#allocation6 + $0x10] sm:$0xff] }
  0x15   :  { %v117_v8 = vld [vmem:[#allocation6 + $0x8] sm:$0xff]  ;;  %v116_v9 = vld [vmem:[#allocation6] sm:$0xff]  ;;  %v160_v10 = vld [vmem:[#allocation7 + $0x38] sm:$0xff] }
  0x16   :  { %141 = vmatpush.msra.mxu1 %v122_v3  ;;  %v159_v11 = vld [vmem:[#allocation7 + $0x30] sm:$0xff]  ;;  %176 = vmatpush.msra.mxu2 %v160_v10  ;;  %v158_v12 = vld [vmem:[#allocation7 + $0x28] sm:$0xff]  ;;  %v157_v13 = vld [vmem:[#allocation7 + $0x20] sm:$0xff] }
  0x17   :  { %v156_v14 = vld [vmem:[#allocation7 + $0x18] sm:$0xff]  ;;  %v206_v15 = vld [vmem:[%s383_s2] ss:$0 sm:$0xff]  ;;  %v154_v20 = vld [vmem:[#allocation7 + $0x8] sm:$0xff] }
  0x18   :  { %142 = vmatpush.msra.mxu1 %v121_v4  ;;  %177 = vmatpush.msra.mxu2 %v159_v11  ;;  %v155_v19 = vld [vmem:[#allocation7 + $0x10] sm:$0xff]  ;;  %v153_v21 = vld [vmem:[#allocation7] sm:$0xff] }
  0x19   :  { %v207_v22 = vld [vmem:[%s385_s4] ss:$0 sm:$0xff] }
  0x1a   :  { %143 = vmatpush.msra.mxu1 %v120_v5  ;;  %178 = vmatpush.msra.mxu2 %v158_v12  ;;  %v208_v26 = vld [vmem:[%s387_s6] ss:$0 sm:$0xff] }
  0x1c   :  { %144 = vmatpush.msra.mxu1 %v119_v6  ;;  %179 = vmatpush.msra.mxu2 %v157_v13 }
  0x1e   :  { %145 = vmatpush.msra.mxu1 %v118_v7  ;;  %180 = vmatpush.msra.mxu2 %v156_v14 }
  0x20   :  { %146 = vmatpush.msra.mxu1 %v117_v8  ;;  %181 = vmatpush.msra.mxu2 %v155_v19 }
  0x22   :  { %147 = vmatpush.msra.mxu1 %v116_v9  ;;  %182 = vmatpush.msra.mxu2 %v154_v20 }
  0x24   :  { %183 = vmatpush.msra.mxu2 %v153_v21 }
  0x91   :  { %v112_v16 = vpop.f32.mrf.mxu0 }
  0x92   :  { %v113_v17 = vadd.f32 %v206_v15, %v112_v16 }
  0x94   :  { %v115_v18 = vmax.f32 %v113_v17, 0.0 }
  0x96   :  { %198 = vmatmul.msk.f32.vlgmr.msra.gmra.mxu1 %vm128_vm1, %v115_v18 }
 0x113   :  { %v149_v23 = vpop.f32.mrf.mxu1 }
 0x114   :  { %v150_v24 = vadd.f32 %v207_v22, %v149_v23 }
 0x116   :  { %v152_v25 = vmax.f32 %v150_v24, 0.0 }
 0x118   :  { %199 = vmatmul.msk.f32.vlgmr.msra.gmra.mxu2 %vm128_vm1, %v152_v25 }
 0x19b   :  { %v185_v27 = vpop.f32.mrf.mxu2 }
 0x19c   :  { %v186_v28 = vadd.f32 %v208_v26, %v185_v27 }
 0x19e   :  { %189 = vst.msk [vmem:[%s388_s7] sm:$0xff] %vm188_vm2, %v186_v28 }
 0x19f   :  { %194 = vsyncpa [#allocation3], 1 }
 0x1a0   :  { %195 = vsyncpa [#allocation5], 1 }
 0x1a1   :  { %196 = vsyncpa [#allocation8], 1 }

</bundles_post_ra>
